<compile_context>
chip_gen: v6e
topology: v6e:2x2x1
jax: 0.10.0
libtpu: 0.0.40
codegen_flags: <defaults>
</compile_context>

<pallas_src>
import jax
import jax.numpy as jnp
from jax.experimental import pallas as pl
from jax.experimental.pallas import tpu as pltpu


def _hardswish(x):
    # hardswish(x) = x * relu6(x + 3) / 6   (computed in f32)
    return x * jnp.clip(x + 3.0, 0.0, 6.0) * (1.0 / 6.0)


def shared_mlp_kernel(x_ref, w1_ref, b1_ref, w2_ref, b2_ref, w3_ref, b3_ref,
                      o_ref):
    # In-kernel cast of x to the MXU operand dtype (bf16 fast path): avoids a
    # separate wrapper-side HBM pass over the input.
    x = x_ref[...].astype(w1_ref.dtype)

    # Dots accumulate in f32 on the MXU; bias add + hardswish stay in f32.
    h = jnp.dot(x, w1_ref[...], preferred_element_type=jnp.float32) + b1_ref[...]
    h = _hardswish(h)

    h = jnp.dot(h.astype(w2_ref.dtype), w2_ref[...],
                preferred_element_type=jnp.float32) + b2_ref[...]
    h = _hardswish(h)

    # Dropout(p=0.5): identity at inference time.

    h = jnp.dot(h.astype(w3_ref.dtype), w3_ref[...],
                preferred_element_type=jnp.float32) + b3_ref[...]
    o_ref[...] = _hardswish(h).astype(o_ref.dtype)


def _round_up(n, m):
    return ((n + m - 1) // m) * m


def _vmem_capacity_bytes():
    """Physical VMEM of this chip; conservative 64 MiB (v7x per-TC) fallback."""
    try:
        cap = int(pltpu.get_tpu_info().vmem_capacity_bytes)
        if cap > 0:
            return cap
    except Exception:  # capability probe only -- never hides kernel errors
        pass
    return 64 * 1024 * 1024


def prepack_params(params, *, use_bf16=True, lane=128):
    """One-time pad (lane-dense) + cast of weights/biases.  Reuse across calls."""
    in_size, hidden = params["w1"].shape
    out_size = params["w3"].shape[1]
    pin = _round_up(in_size, lane)
    phid = _round_up(hidden, lane)
    pout = _round_up(out_size, lane)
    w_dtype = jnp.bfloat16 if use_bf16 else jnp.float32

    def pad2(a, rows, cols, dtype):
        return jnp.pad(a, ((0, rows - a.shape[0]),
                           (0, cols - a.shape[1]))).astype(dtype)

    def padb(a, cols):
        return pad2(a.reshape(1, -1), 1, cols, jnp.float32)

    return {
        "_packed": True,
        "in_size": in_size, "hidden": hidden, "out_size": out_size,
        "pin": pin, "phid": phid, "pout": pout, "lane": lane,
        "w1": pad2(params["w1"], pin, phid, w_dtype),
        "w2": pad2(params["w2"], phid, phid, w_dtype),
        "w3": pad2(params["w3"], phid, pout, w_dtype),
        "b1": padb(params["b1"], phid),
        "b2": padb(params["b2"], phid),
        "b3": padb(params["b3"], pout),
    }


def shared_mlp(x, params, *, block_b=512, use_bf16=True, lane=128,
               x_buffers=2, out_dtype=None):
    """x: (B, input_size).  params: raw dict (w1,b1,w2,b2,w3,b3) or a
    prepack_params() dict (preferred -- padding/cast happens once).

    Returns (B, out_size) in out_dtype (default x.dtype).  block_b is the
    batch tile; weights stay resident in VMEM so large tiles (512-2048) only
    cost x/out tile VMEM.  B does not need to divide the tile."""
    if not isinstance(params, dict) or not params.get("_packed"):
        params = prepack_params(params, use_bf16=use_bf16, lane=lane)
    pk = params

    B, in_size = x.shape
    assert in_size == pk["in_size"], "input feature size mismatch"
    pin, phid, pout = pk["pin"], pk["phid"], pk["pout"]
    out_size = pk["out_size"]
    w_dtype = pk["w1"].dtype
    out_dtype = x.dtype if out_dtype is None else out_dtype

    # ---- x: pad feature dim only (never the batch), skip if already aligned -
    xp = x if in_size == pin else jnp.pad(x, ((0, 0), (0, pin - in_size)))

    # ---- batch tile: 16 sublanes for bf16 packing, 8 for f32; clamp to B ----
    sub = 16 if w_dtype == jnp.bfloat16 else 8
    bb = max(sub, min(_round_up(block_b, sub), _round_up(B, sub)))
    grid = (pl.cdiv(B, bb),)  # last block may run past B; OOB writes are masked

    # ---- VMEM budget (per weight-buffer-count) ------------------------------
    wsz = jnp.dtype(w_dtype).itemsize
    xsz = jnp.dtype(xp.dtype).itemsize
    osz = jnp.dtype(out_dtype).itemsize

    def est_vmem(weight_bufs):
        weights = (pin * phid + phid * phid + phid * pout) * wsz
        biases = (2 * phid + pout) * 4
        e = (weight_bufs * (weights + biases)
             + x_buffers * bb * pin * xsz        # x tiles
             + 2 * bb * pout * osz               # out tiles (double-buffered)
             + 3 * bb * phid * 4)                # f32 intermediates
        return int(1.3 * e)                      # headroom for Mosaic scratch

    def compiler_params(weight_bufs):
        kw = dict(dimension_semantics=("parallel",))  # v7x: shard batch on 2 TCs
        est = est_vmem(weight_bufs)
        if est > 32 * 1024 * 1024:  # above the default scoped limit
            kw["vmem_limit_bytes"] = min(est, int(0.85 * _vmem_capacity_bytes()))
        return pltpu.CompilerParams(**kw)

    def build(single_buffer_weights):
        if single_buffer_weights:
            const = lambda r, c: pl.BlockSpec((r, c), lambda i: (0, 0),
                                              pipeline_mode=pl.Buffered(1))
        else:
            const = lambda r, c: pl.BlockSpec((r, c), lambda i: (0, 0))
        x_kwargs = {}
        if single_buffer_weights and x_buffers != 2:
            x_kwargs["pipeline_mode"] = pl.Buffered(x_buffers)
        return pl.pallas_call(
            shared_mlp_kernel,
            out_shape=jax.ShapeDtypeStruct((B, pout), out_dtype),
            grid_spec=pltpu.PrefetchScalarGridSpec(
                num_scalar_prefetch=0,
                grid=grid,
                in_specs=[
                    pl.BlockSpec((bb, pin), lambda i: (i, 0), **x_kwargs),  # x
                    const(pin, phid),    # w1
                    const(1, phid),      # b1
                    const(phid, phid),   # w2
                    const(1, phid),      # b2
                    const(phid, pout),   # w3
                    const(1, pout),      # b3
                ],
                out_specs=pl.BlockSpec((bb, pout), lambda i: (i, 0)),
            ),
            compiler_params=compiler_params(1 if single_buffer_weights else 2),
        )

    args = (xp, pk["w1"], pk["b1"], pk["w2"], pk["b2"], pk["w3"], pk["b3"])
    try:
        # Constant-index weights single-buffered (halves weight VMEM).
        out = build(True)(*args)
    except (AttributeError, TypeError, NotImplementedError):
        # pl.Buffered / pipeline_mode not available on this jax version only;
        # genuine lowering / VMEM errors propagate.  Estimate recomputed with
        # 2x weight residency inside build(False).
        out = build(False)(*args)

    return out if pout == out_size else out[:, :out_size]


def init_params(key, input_size, hidden_size, out_size):
    """Deterministic init: xavier_uniform weights (as in the module),
    small uniform biases (PyTorch Linear default)."""
    ks = jax.random.split(key, 6)

    def xavier(k, fan_in, fan_out):
        bound = jnp.sqrt(6.0 / (fan_in + fan_out))
        return jax.random.uniform(k, (fan_in, fan_out), jnp.float32,
                                  -bound, bound)

    def bias(k, fan_in, fan_out):
        bound = 1.0 / jnp.sqrt(fan_in)
        return jax.random.uniform(k, (1, fan_out), jnp.float32, -bound, bound)

    return {
        "w1": xavier(ks[0], input_size, hidden_size),
        "b1": bias(ks[1], input_size, hidden_size),
        "w2": xavier(ks[2], hidden_size, hidden_size),
        "b2": bias(ks[3], hidden_size, hidden_size),
        "w3": xavier(ks[4], hidden_size, out_size),
        "b3": bias(ks[5], hidden_size, out_size),
    }


def reference_mlp(x, p):
    h = _hardswish(x @ p["w1"] + p["b1"])
    h = _hardswish(h @ p["w2"] + p["b2"])
    return _hardswish(h @ p["w3"] + p["b3"])


if __name__ == "__main__":
    key = jax.random.PRNGKey(0)
    k_x, k_p = jax.random.split(key)

    B, INPUT, HIDDEN, OUT = 8, 32, 64, 16
    x = jax.random.normal(k_x, (B, INPUT), jnp.float32)
    params = init_params(k_p, INPUT, HIDDEN, OUT)
    ref = reference_mlp(x, params)

    # Exact-f32 path (tight tolerance): pre-pack once, reuse across calls.
    packed_f32 = prepack_params(params, use_bf16=False)
    out = jax.block_until_ready(shared_mlp(x, packed_f32, block_b=512))
    assert out.shape == (B, OUT)
    assert jnp.allclose(out, ref, atol=1e-5, rtol=1e-5), "f32 mismatch vs reference"

    # Default fast path: bf16 MXU operands, f32 accumulate / f32 hardswish.
    packed_bf16 = prepack_params(params, use_bf16=True)
    out_bf16 = jax.block_until_ready(shared_mlp(x, packed_bf16, block_b=512))
    assert out_bf16.shape == (B, OUT)
    assert jnp.allclose(out_bf16, ref, atol=5e-2, rtol=5e-2), \
        "bf16 mismatch vs reference"

    # Ragged batch (B not a multiple of the tile): no batch padding, the last
    # partial block reads/writes out of range and the OOB rows are masked.
    B2 = 10
    x2 = jax.random.normal(k_x, (B2, INPUT), jnp.float32)
    out2 = jax.block_until_ready(shared_mlp(x2, packed_f32, block_b=8))
    assert out2.shape == (B2, OUT)
    assert jnp.allclose(out2, reference_mlp(x2, params), atol=1e-5, rtol=1e-5), \
        "ragged-batch mismatch vs reference"

    # Raw (un-packed) params still accepted -- packed on the fly.
    out3 = jax.block_until_ready(shared_mlp(x, params, use_bf16=True))
    assert out3.shape == (B, OUT)
    assert jnp.allclose(out3, ref, atol=5e-2, rtol=5e-2), \
        "raw-params mismatch vs reference"

    print("KERNEL_OK")
</pallas_src>

<mosaic_0001>
module attributes {stable_mosaic.version = 11 : i64} {
  func.func @shared_mlp_kernel(%arg0: i32, %arg1: memref<8x128xf32, #tpu.memory_space<vmem>>, %arg2: memref<128x128xf32, #tpu.memory_space<vmem>>, %arg3: memref<1x128xf32, #tpu.memory_space<vmem>>, %arg4: memref<128x128xf32, #tpu.memory_space<vmem>>, %arg5: memref<1x128xf32, #tpu.memory_space<vmem>>, %arg6: memref<128x128xf32, #tpu.memory_space<vmem>>, %arg7: memref<1x128xf32, #tpu.memory_space<vmem>>, %arg8: memref<8x128xf32, #tpu.memory_space<vmem>>) attributes {dimension_semantics = [#tpu.dimension_semantics<parallel>], iteration_bounds = array<i64: 1>, scalar_prefetch = 0 : i64, scratch_operands = 0 : i64, tpu.core_type = #tpu.core_type<tc>, window_params = [{transform_indices = @transform_0, window_bounds = array<i64: 8, 128>}, {pipeline_mode = #tpu.pipeline_mode<synchronous>, transform_indices = @transform_1, window_bounds = array<i64: 128, 128>}, {pipeline_mode = #tpu.pipeline_mode<synchronous>, transform_indices = @transform_2, window_bounds = array<i64: 1, 128>}, {pipeline_mode = #tpu.pipeline_mode<synchronous>, transform_indices = @transform_3, window_bounds = array<i64: 128, 128>}, {pipeline_mode = #tpu.pipeline_mode<synchronous>, transform_indices = @transform_4, window_bounds = array<i64: 1, 128>}, {pipeline_mode = #tpu.pipeline_mode<synchronous>, transform_indices = @transform_5, window_bounds = array<i64: 128, 128>}, {pipeline_mode = #tpu.pipeline_mode<synchronous>, transform_indices = @transform_6, window_bounds = array<i64: 1, 128>}, {transform_indices = @transform_7, window_bounds = array<i64: 8, 128>}]} {
    %c0 = arith.constant 0 : index
    %c0_0 = arith.constant 0 : index
    %0 = vector.load %arg1[%c0, %c0_0] : memref<8x128xf32, #tpu.memory_space<vmem>>, vector<8x128xf32>
    %c0_1 = arith.constant 0 : index
    %c0_2 = arith.constant 0 : index
    %1 = vector.load %arg2[%c0_1, %c0_2] : memref<128x128xf32, #tpu.memory_space<vmem>>, vector<128x128xf32>
    %cst = arith.constant dense<0.000000e+00> : vector<8x128xf32>
    %2 = tpu.matmul %0, %1, %cst {dimension_numbers = #tpu.dot_dimension_numbers<[1], [0], [0], [1], [0, 0, 1, 1], [], []>} : vector<8x128xf32>, vector<128x128xf32>, vector<8x128xf32> -> vector<8x128xf32>
    %c0_3 = arith.constant 0 : index
    %c0_4 = arith.constant 0 : index
    %3 = vector.load %arg3[%c0_3, %c0_4] : memref<1x128xf32, #tpu.memory_space<vmem>>, vector<1x128xf32>
    %4 = vector.broadcast %3 : vector<1x128xf32> to vector<8x128xf32>
    %5 = arith.addf %2, %4 : vector<8x128xf32>
    %cst_5 = arith.constant 3.000000e+00 : f32
    %6 = vector.broadcast %cst_5 : f32 to vector<8x128xf32>
    %7 = arith.addf %5, %6 : vector<8x128xf32>
    %cst_6 = arith.constant 0.000000e+00 : f32
    %cst_7 = arith.constant 6.000000e+00 : f32
    %8 = vector.broadcast %cst_6 : f32 to vector<8x128xf32>
    %9 = arith.maximumf %8, %7 : vector<8x128xf32>
    %10 = vector.broadcast %cst_7 : f32 to vector<8x128xf32>
    %11 = arith.minimumf %10, %9 : vector<8x128xf32>
    %12 = arith.mulf %5, %11 : vector<8x128xf32>
    %cst_8 = arith.constant 0.166666672 : f32
    %13 = vector.broadcast %cst_8 : f32 to vector<8x128xf32>
    %14 = arith.mulf %12, %13 : vector<8x128xf32>
    %c0_9 = arith.constant 0 : index
    %c0_10 = arith.constant 0 : index
    %15 = vector.load %arg4[%c0_9, %c0_10] : memref<128x128xf32, #tpu.memory_space<vmem>>, vector<128x128xf32>
    %cst_11 = arith.constant dense<0.000000e+00> : vector<8x128xf32>
    %16 = tpu.matmul %14, %15, %cst_11 {dimension_numbers = #tpu.dot_dimension_numbers<[1], [0], [0], [1], [0, 0, 1, 1], [], []>} : vector<8x128xf32>, vector<128x128xf32>, vector<8x128xf32> -> vector<8x128xf32>
    %c0_12 = arith.constant 0 : index
    %c0_13 = arith.constant 0 : index
    %17 = vector.load %arg5[%c0_12, %c0_13] : memref<1x128xf32, #tpu.memory_space<vmem>>, vector<1x128xf32>
    %18 = vector.broadcast %17 : vector<1x128xf32> to vector<8x128xf32>
    %19 = arith.addf %16, %18 : vector<8x128xf32>
    %cst_14 = arith.constant 3.000000e+00 : f32
    %20 = vector.broadcast %cst_14 : f32 to vector<8x128xf32>
    %21 = arith.addf %19, %20 : vector<8x128xf32>
    %cst_15 = arith.constant 0.000000e+00 : f32
    %cst_16 = arith.constant 6.000000e+00 : f32
    %22 = vector.broadcast %cst_15 : f32 to vector<8x128xf32>
    %23 = arith.maximumf %22, %21 : vector<8x128xf32>
    %24 = vector.broadcast %cst_16 : f32 to vector<8x128xf32>
    %25 = arith.minimumf %24, %23 : vector<8x128xf32>
    %26 = arith.mulf %19, %25 : vector<8x128xf32>
    %cst_17 = arith.constant 0.166666672 : f32
    %27 = vector.broadcast %cst_17 : f32 to vector<8x128xf32>
    %28 = arith.mulf %26, %27 : vector<8x128xf32>
    %c0_18 = arith.constant 0 : index
    %c0_19 = arith.constant 0 : index
    %29 = vector.load %arg6[%c0_18, %c0_19] : memref<128x128xf32, #tpu.memory_space<vmem>>, vector<128x128xf32>
    %cst_20 = arith.constant dense<0.000000e+00> : vector<8x128xf32>
    %30 = tpu.matmul %28, %29, %cst_20 {dimension_numbers = #tpu.dot_dimension_numbers<[1], [0], [0], [1], [0, 0, 1, 1], [], []>} : vector<8x128xf32>, vector<128x128xf32>, vector<8x128xf32> -> vector<8x128xf32>
    %c0_21 = arith.constant 0 : index
    %c0_22 = arith.constant 0 : index
    %31 = vector.load %arg7[%c0_21, %c0_22] : memref<1x128xf32, #tpu.memory_space<vmem>>, vector<1x128xf32>
    %32 = vector.broadcast %31 : vector<1x128xf32> to vector<8x128xf32>
    %33 = arith.addf %30, %32 : vector<8x128xf32>
    %cst_23 = arith.constant 3.000000e+00 : f32
    %34 = vector.broadcast %cst_23 : f32 to vector<8x128xf32>
    %35 = arith.addf %33, %34 : vector<8x128xf32>
    %cst_24 = arith.constant 0.000000e+00 : f32
    %cst_25 = arith.constant 6.000000e+00 : f32
    %36 = vector.broadcast %cst_24 : f32 to vector<8x128xf32>
    %37 = arith.maximumf %36, %35 : vector<8x128xf32>
    %38 = vector.broadcast %cst_25 : f32 to vector<8x128xf32>
    %39 = arith.minimumf %38, %37 : vector<8x128xf32>
    %40 = arith.mulf %33, %39 : vector<8x128xf32>
    %cst_26 = arith.constant 0.166666672 : f32
    %41 = vector.broadcast %cst_26 : f32 to vector<8x128xf32>
    %42 = arith.mulf %40, %41 : vector<8x128xf32>
    %c0_27 = arith.constant 0 : index
    %c0_28 = arith.constant 0 : index
    %43 = vector.load %arg8[%c0_27, %c0_28] : memref<8x128xf32, #tpu.memory_space<vmem>>, vector<8x128xf32>
    tpu.vector_store %arg8[%c0_27, %c0_28], %42 {strides = array<i32>} : memref<8x128xf32, #tpu.memory_space<vmem>>, vector<8x128xf32>,
    return
  }
  func.func @transform_0(%arg0: i32) -> (i32, i32) {
    %c0_i32 = arith.constant 0 : i32
    %c0_i32_0 = arith.constant 0 : i32
    return %arg0, %c0_i32 : i32, i32
  }
  func.func @transform_1(%arg0: i32) -> (i32, i32) {
    %c0_i32 = arith.constant 0 : i32
    %c0_i32_0 = arith.constant 0 : i32
    %c0_i32_1 = arith.constant 0 : i32
    return %c0_i32, %c0_i32_0 : i32, i32
  }
  func.func @transform_2(%arg0: i32) -> (i32, i32) {
    %c0_i32 = arith.constant 0 : i32
    %c0_i32_0 = arith.constant 0 : i32
    %c0_i32_1 = arith.constant 0 : i32
    return %c0_i32, %c0_i32_0 : i32, i32
  }
  func.func @transform_3(%arg0: i32) -> (i32, i32) {
    %c0_i32 = arith.constant 0 : i32
    %c0_i32_0 = arith.constant 0 : i32
    %c0_i32_1 = arith.constant 0 : i32
    return %c0_i32, %c0_i32_0 : i32, i32
  }
  func.func @transform_4(%arg0: i32) -> (i32, i32) {
    %c0_i32 = arith.constant 0 : i32
    %c0_i32_0 = arith.constant 0 : i32
    %c0_i32_1 = arith.constant 0 : i32
    return %c0_i32, %c0_i32_0 : i32, i32
  }
  func.func @transform_5(%arg0: i32) -> (i32, i32) {
    %c0_i32 = arith.constant 0 : i32
    %c0_i32_0 = arith.constant 0 : i32
    %c0_i32_1 = arith.constant 0 : i32
    return %c0_i32, %c0_i32_0 : i32, i32
  }
  func.func @transform_6(%arg0: i32) -> (i32, i32) {
    %c0_i32 = arith.constant 0 : i32
    %c0_i32_0 = arith.constant 0 : i32
    %c0_i32_1 = arith.constant 0 : i32
    return %c0_i32, %c0_i32_0 : i32, i32
  }
  func.func @transform_7(%arg0: i32) -> (i32, i32) {
    %c0_i32 = arith.constant 0 : i32
    %c0_i32_0 = arith.constant 0 : i32
    return %arg0, %c0_i32 : i32, i32
  }
}

</mosaic_0001>

<bundles_post_ra>
// kernel: tpu_custom_call.1
= control target key start
LH: loop header
LB: loop body
LE: loop exit
PB: predicated region body
PF: predicated region fallthrough
CT: control target
= control target key end

     0   :  { %12 = vsyncpa [#allocation3], 0  ;;  %s805_s0 = inlined_call_operand.hbm [shape: f32[8,128], index: 0, kind: input, shape index: {}]   ;;  %s806_s1 = inlined_call_operand.hbm [shape: f32[128,128], index: 1, kind: input, shape index: {}]   ;;  %s807_s2 = inlined_call_operand.vmem [shape: f32[1,128], index: 2, kind: input, shape index: {}]   ;;  %s808_s3 = inlined_call_operand.hbm [shape: f32[128,128], index: 3, kind: input, shape index: {}]   ;;  %s809_s4 = inlined_call_operand.vmem [shape: f32[1,128], index: 4, kind: input, shape index: {}]   ;;  %s810_s5 = inlined_call_operand.hbm [shape: f32[128,128], index: 5, kind: input, shape index: {}]   ;;  %s811_s6 = inlined_call_operand.vmem [shape: f32[1,128], index: 6, kind: input, shape index: {}]   ;;  %s812_s7 = inlined_call_operand.hbm [shape: f32[8,128], index: 7, kind: output, shape index: {}]  }
   0x1   :  { %13 = vsyncpa [#allocation6], 0 }
   0x2   :  { %14 = vsyncpa [#allocation9], 0 }
   0x3   :  { %15 = vsyncpa [#allocation4], 0  ;;  %s669_s24 = smov [#allocation5]  }
   0x4   :  { %s31_s25 = sshll.u32 %s669_s24, 4  ;;  %s32_s25 = int_to_ptr.vmem [resolvable:$true] %s31_s25 }
   0x5   :  { %s569_s26 = scalar_lea.vmem %s32_s25, 2048  ;;  %p574_p1 = scmp.lt.s32.totalorder %s32_s25, %s32_s25 }
   0x6   :  { %p570_p0 = scmp.ne.s32.totalorder %s32_s25, %s569_s26  ;;  %p575_p2 = scmp.lt.s32.totalorder %s569_s26, %s569_s26 }
   0x8   :  { %p576_p3 = por %p575_p2, %p574_p1 }
   0xa   :  { %p577_p4 = pnand %p576_p3, %p570_p0 }
   0xc   :  { %580 = shalt.err (!%p577_p4)
}
   0xd   :  { %s670_s27 = smov 128   ;;  %s671_s28 = smov 8  }
   0xe   :  { %37 = dma.hbm_to_vmem [thread:$0]  %s806_s1, 2048, %s32_s25, [#allocation6], %s670_s27, %s670_s27, %s671_s28  }
   0xf   :  { %s672_s8 = smov [#allocation2]   ;;  %s673_s10 = smov [#allocation7]  }
  0x10   :  { %s22_s9 = sshll.u32 %s672_s8, 4  ;;  %s45_s11 = sshll.u32 %s673_s10, 4  ;;  %s23_s9 = int_to_ptr.vmem [resolvable:$true] %s22_s9  ;;  %s46_s11 = int_to_ptr.vmem [resolvable:$true] %s45_s11 }
  0x11   :  { %s589_s12 = scalar_lea.vmem %s23_s9, 128  ;;  %p594_p6 = scmp.lt.s32.totalorder %s23_s9, %s23_s9 }
  0x12   :  { %p590_p5 = scmp.ne.s32.totalorder %s23_s9, %s589_s12  ;;  %p595_p7 = scmp.lt.s32.totalorder %s589_s12, %s589_s12 }
  0x14   :  { %p596_p8 = por %p595_p7, %p594_p6 }
  0x16   :  { %p597_p9 = pnand %p596_p8, %p590_p5 }
  0x18   :  { %600 = shalt.err (!%p597_p9)
}
  0x19   :  { %25 = dma.hbm_to_vmem [thread:$0]  %s805_s0, 128, %s23_s9, [#allocation3]  }
  0x1a   :  { %s609_s15 = scalar_lea.vmem %s46_s11, 2048  ;;  %p614_p11 = scmp.lt.s32.totalorder %s46_s11, %s46_s11 }
  0x1b   :  { %p610_p10 = scmp.ne.s32.totalorder %s46_s11, %s609_s15  ;;  %p615_p12 = scmp.lt.s32.totalorder %s609_s15, %s609_s15 }
  0x1d   :  { %p616_p13 = por %p615_p12, %p614_p11 }
  0x1f   :  { %p617_p0 = pnand %p616_p13, %p610_p10 }
  0x21   :  { %620 = shalt.err (!%p617_p0)
}
  0x22   :  { %51 = dma.hbm_to_vmem [thread:$0]  %s808_s3, 2048, %s46_s11, [#allocation6], %s670_s27, %s670_s27, %s671_s28  }
  0x23   :  { %s674_s17 = smov [#allocation8]  }
  0x24   :  { %s59_s18 = sshll.u32 %s674_s17, 4  ;;  %s60_s18 = int_to_ptr.vmem [resolvable:$true] %s59_s18 }
  0x25   :  { %s629_s19 = scalar_lea.vmem %s60_s18, 2048  ;;  %p634_p2 = scmp.lt.s32.totalorder %s60_s18, %s60_s18 }
  0x26   :  { %p630_p1 = scmp.ne.s32.totalorder %s60_s18, %s629_s19  ;;  %p635_p3 = scmp.lt.s32.totalorder %s629_s19, %s629_s19 }
  0x28   :  { %p636_p4 = por %p635_p3, %p634_p2 }
  0x2a   :  { %p637_p5 = pnand %p636_p4, %p630_p1 }
  0x2c   :  { %640 = shalt.err (!%p637_p5)
}
  0x2d   :  { %65 = dma.hbm_to_vmem [thread:$0]  %s810_s5, 2048, %s60_s18, [#allocation9], %s670_s27, %s670_s27, %s671_s28  }
  0x2e   :  { %661 = dma.done.wait [#allocation3], 128  }
  0x2f   :  { %662 = vsyncadd [#allocation3], 4294967168 }
  0x30   :  { %663 = dma.done.wait [#allocation6], 4096  }
  0x31   :  { %664 = vsyncadd [#allocation6], 4294963200 }
  0x32   :  { %665 = dma.done.wait [#allocation9], 2048  }
  0x33   :  { %666 = vsyncadd [#allocation9], 4294965248  ;;  %v675_v0 = vmov 0.0   ;;  %vm676_vm0 = vmmov 0   ;;  %v96_v1 = vld [vmem:[#allocation5 + $0x78] sm:$0xff]  ;;  %v95_v2 = vld [vmem:[#allocation5 + $0x70] sm:$0xff] }
  0x34   :  { %447 = vmatprep.subr.mxu0 %v675_v0  ;;  %479 = vmatprep.mubr.msk.f32.mxu0 %vm676_vm0, %v675_v0  ;;  %v94_v3 = vld [vmem:[#allocation5 + $0x68] sm:$0xff]  ;;  %v93_v4 = vld [vmem:[#allocation5 + $0x60] sm:$0xff]  ;;  %v194_v5 = vld [vmem:[#allocation7 + $0x78] sm:$0xff] }
  0x35   :  { %482 = vmatprep.subr.mxu1 %v675_v0  ;;  %514 = vmatprep.mubr.msk.f32.mxu1 %vm676_vm0, %v675_v0  ;;  %v92_v6 = vld [vmem:[#allocation5 + $0x58] sm:$0xff]  ;;  %v193_v7 = vld [vmem:[#allocation7 + $0x70] sm:$0xff]  ;;  %v192_v8 = vld [vmem:[#allocation7 + $0x68] sm:$0xff] }
  0x36   :  { %448 = vmatpush3.msra.mxu0 %v96_v1  ;;  %483 = vmatpush3.msra.mxu1 %v194_v5  ;;  %v91_v9 = vld [vmem:[#allocation5 + $0x50] sm:$0xff]  ;;  %v191_v10 = vld [vmem:[#allocation7 + $0x60] sm:$0xff]  ;;  %v90_v11 = vld [vmem:[#allocation5 + $0x48] sm:$0xff] }
  0x37   :  { %449 = vmatprep.subr.mxu0 %v675_v0  ;;  %484 = vmatprep.subr.mxu1 %v675_v0  ;;  %v190_v12 = vld [vmem:[#allocation7 + $0x58] sm:$0xff]  ;;  %v89_v13 = vld [vmem:[#allocation5 + $0x40] sm:$0xff]  ;;  %v189_v14 = vld [vmem:[#allocation7 + $0x50] sm:$0xff] }
  0x38   :  { %450 = vmatpush3.msra.mxu0 %v95_v2  ;;  %485 = vmatpush3.msra.mxu1 %v193_v7  ;;  %v88_v15 = vld [vmem:[#allocation5 + $0x38] sm:$0xff]  ;;  %v188_v16 = vld [vmem:[#allocation7 + $0x48] sm:$0xff]  ;;  %v87_v17 = vld [vmem:[#allocation5 + $0x30] sm:$0xff] }
  0x39   :  { %451 = vmatprep.subr.mxu0 %v675_v0  ;;  %486 = vmatprep.subr.mxu1 %v675_v0  ;;  %v187_v18 = vld [vmem:[#allocation7 + $0x40] sm:$0xff]  ;;  %v86_v19 = vld [vmem:[#allocation5 + $0x28] sm:$0xff]  ;;  %v186_v20 = vld [vmem:[#allocation7 + $0x38] sm:$0xff] }
  0x3a   :  { %452 = vmatpush3.msra.mxu0 %v94_v3  ;;  %487 = vmatpush3.msra.mxu1 %v192_v8  ;;  %v85_v21 = vld [vmem:[#allocation5 + $0x20] sm:$0xff]  ;;  %v84_v22 = vld [vmem:[#allocation5 + $0x18] sm:$0xff]  ;;  %v83_v23 = vld [vmem:[#allocation5 + $0x10] sm:$0xff] }
  0x3b   :  { %453 = vmatprep.subr.mxu0 %v675_v0  ;;  %488 = vmatprep.subr.mxu1 %v675_v0  ;;  %v82_v24 = vld [vmem:[#allocation5 + $0x8] sm:$0xff]  ;;  %v81_v25 = vld [vmem:[#allocation5] sm:$0xff]  ;;  %v80_v26 = vld [vmem:[#allocation2] sm:$0xff] }
  0x3c   :  { %454 = vmatpush3.msra.mxu0 %v93_v4  ;;  %489 = vmatpush3.msra.mxu1 %v191_v10  ;;  %v185_v27 = vld [vmem:[#allocation7 + $0x30] sm:$0xff]  ;;  %v184_v28 = vld [vmem:[#allocation7 + $0x28] sm:$0xff]  ;;  %v183_v29 = vld [vmem:[#allocation7 + $0x20] sm:$0xff] }
  0x3d   :  { %455 = vmatprep.subr.mxu0 %v675_v0  ;;  %490 = vmatprep.subr.mxu1 %v675_v0  ;;  %v182_v30 = vld [vmem:[#allocation7 + $0x18] sm:$0xff]  ;;  %v181_v31 = vld [vmem:[#allocation7 + $0x10] sm:$0xff]  ;;  %v180_v32 = vld [vmem:[#allocation7 + $0x8] sm:$0xff] }
  0x3e   :  { %456 = vmatpush3.msra.mxu0 %v92_v6  ;;  %491 = vmatpush3.msra.mxu1 %v190_v12  ;;  %v179_v33 = vld [vmem:[#allocation7] sm:$0xff]  ;;  %v292_v34 = vld [vmem:[#allocation8 + $0x78] sm:$0xff]  ;;  %v291_v35 = vld [vmem:[#allocation8 + $0x70] sm:$0xff] }
  0x3f   :  { %457 = vmatprep.subr.mxu0 %v675_v0  ;;  %492 = vmatprep.subr.mxu1 %v675_v0  ;;  %v290_v36 = vld [vmem:[#allocation8 + $0x68] sm:$0xff]  ;;  %v289_v37 = vld [vmem:[#allocation8 + $0x60] sm:$0xff]  ;;  %v288_v38 = vld [vmem:[#allocation8 + $0x58] sm:$0xff] }
  0x40   :  { %458 = vmatpush3.msra.mxu0 %v91_v9  ;;  %493 = vmatpush3.msra.mxu1 %v189_v14  ;;  %v287_v39 = vld [vmem:[#allocation8 + $0x50] sm:$0xff]  ;;  %v286_v40 = vld [vmem:[#allocation8 + $0x48] sm:$0xff]  ;;  %v285_v41 = vld [vmem:[#allocation8 + $0x40] sm:$0xff] }
  0x41   :  { %459 = vmatprep.subr.mxu0 %v675_v0  ;;  %494 = vmatprep.subr.mxu1 %v675_v0  ;;  %v284_v42 = vld [vmem:[#allocation8 + $0x38] sm:$0xff]  ;;  %v283_v52 = vld [vmem:[#allocation8 + $0x30] sm:$0xff]  ;;  %v282_v53 = vld [vmem:[#allocation8 + $0x28] sm:$0xff] }
  0x42   :  { %460 = vmatpush3.msra.mxu0 %v90_v11  ;;  %495 = vmatpush3.msra.mxu1 %v188_v16  ;;  %v393_v43 = vld [vmem:[%s807_s2] ss:$0 sm:$0xff]  ;;  %v281_v54 = vld [vmem:[#allocation8 + $0x20] sm:$0xff]  ;;  %v279_v56 = vld [vmem:[#allocation8 + $0x10] sm:$0xff] }
  0x43   :  { %461 = vmatprep.subr.mxu0 %v675_v0  ;;  %496 = vmatprep.subr.mxu1 %v675_v0  ;;  %v280_v55 = vld [vmem:[#allocation8 + $0x18] sm:$0xff]  ;;  %v278_v57 = vld [vmem:[#allocation8 + $0x8] sm:$0xff]  ;;  %v277_v58 = vld [vmem:[#allocation8] sm:$0xff] }
  0x44   :  { %462 = vmatpush3.msra.mxu0 %v89_v13  ;;  %497 = vmatpush3.msra.mxu1 %v187_v18  ;;  %v394_v59 = vld [vmem:[%s809_s4] ss:$0 sm:$0xff]  ;;  %s677_s4 = smov [#allocation10]  }
  0x45   :  { %463 = vmatprep.subr.mxu0 %v675_v0  ;;  %498 = vmatprep.subr.mxu1 %v675_v0  ;;  %v395_v5 = vld [vmem:[%s811_s6] ss:$0 sm:$0xff]  ;;  %s382_s24 = sshll.u32 %s677_s4, 4  ;;  %s383_s24 = int_to_ptr.vmem [resolvable:$true] %s382_s24 }
  0x46   :  { %464 = vmatpush3.msra.mxu0 %v88_v15  ;;  %499 = vmatpush3.msra.mxu1 %v186_v20  ;;  %s641_s25 = scalar_lea.vmem %s383_s24, 128  ;;  %p646_p7 = scmp.lt.s32.totalorder %s383_s24, %s383_s24 }
  0x47   :  { %465 = vmatprep.subr.mxu0 %v675_v0  ;;  %500 = vmatprep.subr.mxu1 %v675_v0  ;;  %p642_p6 = scmp.ne.s32.totalorder %s383_s24, %s641_s25  ;;  %p647_p8 = scmp.lt.s32.totalorder %s641_s25, %s641_s25 }
  0x48   :  { %466 = vmatpush3.msra.mxu0 %v87_v17  ;;  %501 = vmatpush3.msra.mxu1 %v185_v27 }
  0x49   :  { %467 = vmatprep.subr.mxu0 %v675_v0  ;;  %502 = vmatprep.subr.mxu1 %v675_v0  ;;  %p648_p9 = por %p647_p8, %p646_p7 }
  0x4a   :  { %468 = vmatpush3.msra.mxu0 %v86_v19  ;;  %503 = vmatpush3.msra.mxu1 %v184_v28 }
  0x4b   :  { %469 = vmatprep.subr.mxu0 %v675_v0  ;;  %504 = vmatprep.subr.mxu1 %v675_v0  ;;  %p649_p10 = pnand %p648_p9, %p642_p6 }
  0x4c   :  { %470 = vmatpush3.msra.mxu0 %v85_v21  ;;  %505 = vmatpush3.msra.mxu1 %v183_v29 }
  0x4d   :  { %471 = vmatprep.subr.mxu0 %v675_v0  ;;  %506 = vmatprep.subr.mxu1 %v675_v0 }
  0x4e   :  { %472 = vmatpush3.msra.mxu0 %v84_v22  ;;  %507 = vmatpush3.msra.mxu1 %v182_v30 }
  0x4f   :  { %473 = vmatprep.subr.mxu0 %v675_v0  ;;  %508 = vmatprep.subr.mxu1 %v675_v0 }
  0x50   :  { %474 = vmatpush3.msra.mxu0 %v83_v23  ;;  %509 = vmatpush3.msra.mxu1 %v181_v31 }
  0x51   :  { %475 = vmatprep.subr.mxu0 %v675_v0  ;;  %510 = vmatprep.subr.mxu1 %v675_v0 }
  0x52   :  { %476 = vmatpush3.msra.mxu0 %v82_v24  ;;  %511 = vmatpush3.msra.mxu1 %v180_v32 }
  0x53   :  { %477 = vmatprep.subr.mxu0 %v675_v0  ;;  %512 = vmatprep.subr.mxu1 %v675_v0 }
  0x54   :  { %478 = vmatpush3.msra.mxu0 %v81_v25  ;;  %513 = vmatpush3.msra.mxu1 %v179_v33 }
  0x55   :  { %480 = vmatmul.mubr.f32.vlgmr.msra.gmra.mxu0 %v80_v26  ;;  %517 = vmatprep.subr.mxu0 %v675_v0 }
  0x56   :  { %549 = vmatprep.mubr.msk.f32.mxu0 %vm676_vm0, %v675_v0  ;;  %518 = vmatpush3.msra.mxu0 %v292_v34 }
  0x57   :  { %519 = vmatprep.subr.mxu0 %v675_v0 }
  0x58   :  { %520 = vmatpush3.msra.mxu0 %v291_v35 }
  0x59   :  { %521 = vmatprep.subr.mxu0 %v675_v0 }
  0x5a   :  { %522 = vmatpush3.msra.mxu0 %v290_v36 }
  0x5b   :  { %523 = vmatprep.subr.mxu0 %v675_v0 }
  0x5c   :  { %524 = vmatpush3.msra.mxu0 %v289_v37 }
  0x5d   :  { %525 = vmatprep.subr.mxu0 %v675_v0 }
  0x5e   :  { %526 = vmatpush3.msra.mxu0 %v288_v38 }
  0x5f   :  { %527 = vmatprep.subr.mxu0 %v675_v0 }
  0x60   :  { %528 = vmatpush3.msra.mxu0 %v287_v39 }
  0x61   :  { %529 = vmatprep.subr.mxu0 %v675_v0 }
  0x62   :  { %530 = vmatpush3.msra.mxu0 %v286_v40 }
  0x63   :  { %531 = vmatprep.subr.mxu0 %v675_v0 }
  0x64   :  { %532 = vmatpush3.msra.mxu0 %v285_v41 }
  0x65   :  { %533 = vmatprep.subr.mxu0 %v675_v0 }
  0x66   :  { %534 = vmatpush3.msra.mxu0 %v284_v42 }
  0x67   :  { %535 = vmatprep.subr.mxu0 %v675_v0 }
  0x68   :  { %536 = vmatpush3.msra.mxu0 %v283_v52 }
  0x69   :  { %537 = vmatprep.subr.mxu0 %v675_v0 }
  0x6a   :  { %538 = vmatpush3.msra.mxu0 %v282_v53 }
  0x6b   :  { %539 = vmatprep.subr.mxu0 %v675_v0 }
  0x6c   :  { %540 = vmatpush3.msra.mxu0 %v281_v54 }
  0x6d   :  { %541 = vmatprep.subr.mxu0 %v675_v0 }
  0x6e   :  { %542 = vmatpush3.msra.mxu0 %v280_v55 }
  0x6f   :  { %543 = vmatprep.subr.mxu0 %v675_v0 }
  0x70   :  { %544 = vmatpush3.msra.mxu0 %v279_v56 }
  0x71   :  { %545 = vmatprep.subr.mxu0 %v675_v0 }
  0x72   :  { %546 = vmatpush3.msra.mxu0 %v278_v57 }
  0x73   :  { %547 = vmatprep.subr.mxu0 %v675_v0 }
  0x74   :  { %548 = vmatpush3.msra.mxu0 %v277_v58 }
 0x115   :  { %v170_v44 = vpop.f32.mrf.mxu0 }
 0x116   :  { %v171_v45 = vadd.f32 %v393_v43, %v170_v44 }
 0x117   :  { %v481_v46 = vpop.f32.mrf.mxu0 }
 0x118   :  { %v174_v47 = vadd.f32 3.0, %v171_v45 }
 0x11a   :  { %v175_v48 = vmax.f32 %v174_v47, 0.0 }
 0x11c   :  { %v176_v49 = vmin.f32 %v175_v48, 6.0 }
 0x11e   :  { %v177_v50 = vmul.f32 %v176_v49, %v171_v45 }
 0x120   :  { %v178_v51 = vmul.f32 0.16666667, %v177_v50 }
 0x122   :  { %515 = vmatmul.mubr.f32.vlgmr.msra.gmra.mxu1 %v178_v51 }
 0x1e2   :  { %v268_v60 = vpop.f32.mrf.mxu1 }
 0x1e3   :  { %v269_v61 = vadd.f32 %v394_v59, %v268_v60 }
 0x1e4   :  { %v516_v62 = vpop.f32.mrf.mxu1 }
 0x1e5   :  { %v272_v63 = vadd.f32 3.0, %v269_v61 }
 0x1e7   :  { %v273_v1 = vmax.f32 %v272_v63, 0.0 }
 0x1e9   :  { %v274_v2 = vmin.f32 %v273_v1, 6.0 }
 0x1eb   :  { %v275_v3 = vmul.f32 %v274_v2, %v269_v61 }
 0x1ed   :  { %v276_v4 = vmul.f32 0.16666667, %v275_v3 }
 0x1ef   :  { %550 = vmatmul.mubr.f32.vlgmr.msra.gmra.mxu0 %v276_v4 }
 0x2af   :  { %v366_v0 = vpop.f32.mrf.mxu0 }
 0x2b0   :  { %v367_v6 = vadd.f32 %v395_v5, %v366_v0 }
 0x2b1   :  { %v551_v7 = vpop.f32.mrf.mxu0 }
 0x2b2   :  { %v370_v8 = vadd.f32 3.0, %v367_v6 }
 0x2b4   :  { %v371_v9 = vmax.f32 %v370_v8, 0.0 }
 0x2b6   :  { %v372_v10 = vmin.f32 %v371_v9, 6.0 }
 0x2b8   :  { %v373_v11 = vmul.f32 %v372_v10, %v367_v6 }
 0x2ba   :  { %v374_v12 = vmul.f32 0.16666667, %v373_v11 }
 0x2bc   :  { %375 = vst [vmem:[#allocation10] sm:$0xff] %v374_v12 }
 0x2bd   :  { %652 = shalt.err (!%p649_p10)
}
 0x2be   :  { %385 = dma.vmem_to_hbm [thread:$0]  %s383_s24, 128, %s812_s7, [#allocation4]  }
 0x2bf   :  { %667 = dma.done.wait [#allocation4], 128  }
 0x2c0   :  { %668 = vsyncadd [#allocation4], 4294967168 }
 0x2c1   :  { %389 = vsyncpa [#allocation3], 1 }
 0x2c2   :  { %390 = vsyncpa [#allocation6], 1 }
 0x2c3   :  { %391 = vsyncpa [#allocation9], 1 }
 0x2c4   :  { %392 = vsyncpa [#allocation4], 1 }

</bundles_post_ra>
